<compile_context>
chip_gen: v6e
topology: v6e:2x2x1
jax: 0.10.0
libtpu: 0.0.40
codegen_flags: <defaults>
</compile_context>

<pallas_src>
import jax
import jax.numpy as jnp
from jax.experimental import pallas as pl
from jax.experimental.pallas import tpu as pltpu

BN_EPS = 1e-5
LANE = 128


# -----------------------------------------------------------------------------
# Small helpers
# -----------------------------------------------------------------------------
def _round_up(x, m):
    return ((x + m - 1) // m) * m


def _pad2(a, rows, cols):
    return jnp.pad(a, ((0, rows - a.shape[0]), (0, cols - a.shape[1])))


def _largest_divisor_tile(total, max_tile, multiple):
    """Largest multiple of `multiple` that divides `total`, capped at max_tile."""
    cand = max(multiple, (max_tile // multiple) * multiple)
    while cand > multiple:
        if total % cand == 0:
            return cand
        cand -= multiple
    return multiple


def _vmem_limit_bytes():
    cap = 128 * 1024 * 1024
    try:
        info = pltpu.get_tpu_info()
        cap = int(getattr(info, "vmem_capacity_bytes", cap))
    except Exception:
        pass
    # ~75% of physical, leaving headroom for Mosaic's internal scratch.
    return max(32 * 1024 * 1024, min(cap * 3 // 4, 112 * 1024 * 1024))


_VMEM_LIMIT = _vmem_limit_bytes()


def _cparams(dimension_semantics):
    return pltpu.CompilerParams(dimension_semantics=dimension_semantics,
                                vmem_limit_bytes=_VMEM_LIMIT)


# -----------------------------------------------------------------------------
# Kernels
# -----------------------------------------------------------------------------
def _agg_kernel_w(a_ref, feat_ref, w_ref, h_ref, ssum_ref, ssq_ref, acc_ref):
    # acc += A_block @ feat_block ; on last K block: h = acc @ W, emit BN stats.
    k = pl.program_id(1)

    @pl.when(k == 0)
    def _():
        acc_ref[...] = jnp.zeros_like(acc_ref)

    acc_ref[...] += jnp.dot(a_ref[...], feat_ref[...],
                            preferred_element_type=jnp.float32)

    @pl.when(k == pl.num_programs(1) - 1)
    def _():
        t = jnp.dot(acc_ref[...], w_ref[...], preferred_element_type=jnp.float32)
        h_ref[...] = t.astype(h_ref.dtype)
        ssum_ref[...] = jnp.sum(t, axis=0, keepdims=True)[None]       # (1,1,F)
        ssq_ref[...] = jnp.sum(t * t, axis=0, keepdims=True)[None]    # (1,1,F)


def _agg_kernel_nw(a_ref, feat_ref, h_ref, ssum_ref, ssq_ref, acc_ref):
    # Same as above, no trailing weight matmul.
    k = pl.program_id(1)

    @pl.when(k == 0)
    def _():
        acc_ref[...] = jnp.zeros_like(acc_ref)

    acc_ref[...] += jnp.dot(a_ref[...], feat_ref[...],
                            preferred_element_type=jnp.float32)

    @pl.when(k == pl.num_programs(1) - 1)
    def _():
        t = acc_ref[...]
        h_ref[...] = t.astype(h_ref.dtype)
        ssum_ref[...] = jnp.sum(t, axis=0, keepdims=True)[None]
        ssq_ref[...] = jnp.sum(t * t, axis=0, keepdims=True)[None]


def _bn_relu_linear_kernel(h_ref, scale_ref, shift_ref, w_ref, o_ref):
    # relu(BN(h)) @ W with BN folded into per-channel scale/shift (f32 math).
    h = h_ref[...].astype(jnp.float32)
    t = jnp.maximum(h * scale_ref[...] + shift_ref[...], 0.0)
    o_ref[...] = jnp.dot(t, w_ref[...],
                         preferred_element_type=jnp.float32).astype(o_ref.dtype)


def _bn_residual_relu_kernel(h_ref, scale_ref, shift_ref, x_ref, o_ref):
    h = h_ref[...].astype(jnp.float32)
    o_ref[...] = jnp.maximum(h * scale_ref[...] + shift_ref[...] + x_ref[...], 0.0)


# -----------------------------------------------------------------------------
# pallas_call wrappers
# -----------------------------------------------------------------------------
def _gcn_aggregate(a_p, feat, w, *, tile_m, tile_k, h_dtype):
    """h = (A @ feat) [@ w], row- and K-tiled, plus per-row-block BN partials."""
    n_pad = a_p.shape[0]
    f_in = feat.shape[1]
    f_out = w.shape[1] if w is not None else f_in
    n_row_blocks = n_pad // tile_m
    n_k_blocks = n_pad // tile_k

    in_specs = [
        pl.BlockSpec((tile_m, tile_k), lambda i, k: (i, k)),   # A_hat block
        pl.BlockSpec((tile_k, f_in), lambda i, k: (k, 0)),     # feature K-block
    ]
    args = [a_p, feat]
    if w is not None:
        in_specs.append(pl.BlockSpec((f_in, f_out), lambda i, k: (0, 0)))
        args.append(w)
        kernel = _agg_kernel_w
    else:
        kernel = _agg_kernel_nw

    return pl.pallas_call(
        kernel,
        out_shape=(
            jax.ShapeDtypeStruct((n_pad, f_out), h_dtype),
            jax.ShapeDtypeStruct((n_row_blocks, 1, f_out), jnp.float32),  # sums
            jax.ShapeDtypeStruct((n_row_blocks, 1, f_out), jnp.float32),  # sumsq
        ),
        grid=(n_row_blocks, n_k_blocks),
        in_specs=in_specs,
        out_specs=(
            pl.BlockSpec((tile_m, f_out), lambda i, k: (i, 0)),
            pl.BlockSpec((1, 1, f_out), lambda i, k: (i, 0, 0)),
            pl.BlockSpec((1, 1, f_out), lambda i, k: (i, 0, 0)),
        ),
        scratch_shapes=[pltpu.VMEM((tile_m, f_in), jnp.float32)],
        compiler_params=_cparams(("parallel", "arbitrary")),
    )(*args)


def _bn_relu_linear(h, scale, shift, w, *, tile_m, out_dtype):
    n_pad, f_in = h.shape
    f_out = w.shape[1]
    n_blocks = n_pad // tile_m
    return pl.pallas_call(
        _bn_relu_linear_kernel,
        out_shape=jax.ShapeDtypeStruct((n_pad, f_out), out_dtype),
        grid=(n_blocks,),
        in_specs=[
            pl.BlockSpec((tile_m, f_in), lambda i: (i, 0)),
            pl.BlockSpec((1, f_in), lambda i: (0, 0)),
            pl.BlockSpec((1, f_in), lambda i: (0, 0)),
            pl.BlockSpec((f_in, f_out), lambda i: (0, 0)),
        ],
        out_specs=pl.BlockSpec((tile_m, f_out), lambda i: (i, 0)),
        compiler_params=_cparams(("parallel",)),
    )(h, scale, shift, w)


def _bn_residual_relu(h, scale, shift, x, *, tile_m):
    n_pad, f = h.shape
    n_blocks = n_pad // tile_m
    return pl.pallas_call(
        _bn_residual_relu_kernel,
        out_shape=jax.ShapeDtypeStruct((n_pad, f), jnp.float32),
        grid=(n_blocks,),
        in_specs=[
            pl.BlockSpec((tile_m, f), lambda i: (i, 0)),
            pl.BlockSpec((1, f), lambda i: (0, 0)),
            pl.BlockSpec((1, f), lambda i: (0, 0)),
            pl.BlockSpec((tile_m, f), lambda i: (i, 0)),
        ],
        out_specs=pl.BlockSpec((tile_m, f), lambda i: (i, 0)),
        compiler_params=_cparams(("parallel",)),
    )(h, scale, shift, x)


def _bn_fold(ssum, ssq, gamma, beta, inv_n):
    """Fold per-block [sum, sumsq] partials into BN scale/shift (tiny JAX glue).

    Note: single-pass variance (E[h^2]-E[h]^2) can lose precision for channels
    with large mean / tiny variance; acceptable here (post-aggregation features
    have O(1) statistics), revisit with a two-pass scheme for extreme graphs.
    """
    mu = jnp.sum(ssum, axis=0) * inv_n                      # (1, F)
    ex2 = jnp.sum(ssq, axis=0) * inv_n                      # (1, F)
    var = jnp.maximum(ex2 - mu * mu, 0.0)                   # biased, training-mode
    inv_std = jax.lax.rsqrt(var + BN_EPS)
    scale = gamma * inv_std
    shift = beta - mu * scale
    return scale, shift


# -----------------------------------------------------------------------------
# Forward
# -----------------------------------------------------------------------------
def gcn_res_forward(a_hat, x, w1, w2, g1, b1, g2, b2, *,
                    compute_dtype=jnp.bfloat16,
                    tile_m_max=512, tile_k_max=1024, tile_m_ew_max=1024):
    """GCNRes forward.  a_hat: [N,N], x: [N,C], w1: [C,C_in], w2: [C_in,C].

    compute_dtype (float32 or bfloat16) is the dtype A_hat, the streamed
    features and the h1/hw2 intermediates are held in; MXU accumulation and all
    BN / residual math are f32 regardless.
    """
    f32 = jnp.float32
    n, c = x.shape
    c_in = w1.shape[1]

    itemsize = jnp.dtype(compute_dtype).itemsize
    pack = max(8, 32 // itemsize)            # sublane pack: 8 f32, 16 bf16, 32 fp8

    # Lane-dense node padding; tiles are divisors of it (no extra row padding,
    # A block second-to-last dim is a multiple of the dtype pack factor).
    n_pad = _round_up(n, LANE)
    tile_k = _largest_divisor_tile(n_pad, max(tile_k_max, LANE), LANE)
    tile_m = _largest_divisor_tile(n_pad, max(tile_m_max, pack), pack)
    tile_m_ew = _largest_divisor_tile(n_pad, max(tile_m_ew_max, pack), pack)

    c_pad = _round_up(c, LANE)
    cin_pad = _round_up(c_in, LANE)
    inv_n = jnp.float32(1.0 / n)             # BN denominators use the REAL node count

    a_p = _pad2(a_hat.astype(f32), n_pad, n_pad).astype(compute_dtype)
    x_p = _pad2(x.astype(f32), n_pad, c_pad)                 # f32 copy for residual
    w1_p = _pad2(w1.astype(f32), c_pad, cin_pad)
    w2_p = _pad2(w2.astype(f32), cin_pad, c_pad)
    g1_p = _pad2(jnp.reshape(g1, (1, -1)).astype(f32), 1, cin_pad)
    b1_p = _pad2(jnp.reshape(b1, (1, -1)).astype(f32), 1, cin_pad)
    g2_p = _pad2(jnp.reshape(g2, (1, -1)).astype(f32), 1, c_pad)
    b2_p = _pad2(jnp.reshape(b2, (1, -1)).astype(f32), 1, c_pad)

    # Layer 1: h1 = (A @ X) @ W1   (+ per-block partial BN stats)
    h1, s1, q1 = _gcn_aggregate(a_p, x_p.astype(compute_dtype), w1_p,
                                tile_m=tile_m, tile_k=tile_k,
                                h_dtype=compute_dtype)
    scale1, shift1 = _bn_fold(s1, q1, g1_p, b1_p, inv_n)

    # BN1 + ReLU + (H1 @ W2), row-parallel elementwise/matmul pass
    hw2 = _bn_relu_linear(h1, scale1, shift1, w2_p,
                          tile_m=tile_m_ew, out_dtype=compute_dtype)

    # Layer 2: h2 = A @ (relu(BN1(H1)) @ W2)   (+ per-block partial BN stats)
    h2, s2, q2 = _gcn_aggregate(a_p, hw2, None,
                                tile_m=tile_m, tile_k=tile_k, h_dtype=f32)
    scale2, shift2 = _bn_fold(s2, q2, g2_p, b2_p, inv_n)

    # BN2 + residual + ReLU
    out_p = _bn_residual_relu(h2, scale2, shift2, x_p, tile_m=tile_m_ew)
    return out_p[:n, :c]


# -----------------------------------------------------------------------------
# Glue (plain JAX): adjacency construction, pure-JAX reference
# -----------------------------------------------------------------------------
def build_normalized_adjacency(edge_index, num_nodes):
    """A_hat = D^-1/2 (A + I) D^-1/2, matching PyG gcn_norm (add_self_loops=True)."""
    src, dst = edge_index[0], edge_index[1]
    loops = jnp.arange(num_nodes, dtype=src.dtype)
    src = jnp.concatenate([src, loops])
    dst = jnp.concatenate([dst, loops])
    A = jnp.zeros((num_nodes, num_nodes), jnp.float32).at[dst, src].add(1.0)
    deg = A.sum(axis=1)
    dinv = jnp.where(deg > 0, deg ** -0.5, 0.0)
    return dinv[:, None] * A * dinv[None, :]


def reference_forward(a_hat, x, w1, w2, g1, b1, g2, b2):
    def bn(h, g, b):
        mu = h.mean(axis=0, keepdims=True)
        var = ((h - mu) ** 2).mean(axis=0, keepdims=True)
        return (h - mu) / jnp.sqrt(var + BN_EPS) * g + b

    h1 = a_hat @ (x @ w1)
    h1 = jnp.maximum(bn(h1, g1, b1), 0.0)
    h2 = a_hat @ (h1 @ w2)
    h2 = bn(h2, g2, b2)
    return jnp.maximum(h2 + x, 0.0)


if __name__ == "__main__":
    key = jax.random.PRNGKey(0)
    k_x, k_w1, k_w2 = jax.random.split(key, 3)

    N, C = 300, 8                # nodes, channels (module default)
    C_in = 2 * C                 # inner_channels = channels * 2

    x = jax.random.normal(k_x, (N, C), jnp.float32)

    # Deterministic edge list (ring + fixed-stride chords), shape [2, E]
    ring_src = jnp.arange(N, dtype=jnp.int32)
    ring_dst = (ring_src + 1) % N
    chord_src = jnp.arange(0, N, 7, dtype=jnp.int32)
    chord_dst = (chord_src * 13 + 29) % N
    es = jnp.stack([jnp.concatenate([ring_src, chord_src]),
                    jnp.concatenate([ring_dst, chord_dst])], axis=0)

    a_hat = build_normalized_adjacency(es, N)

    # Deterministic parameters (GCNConv lin: out = x @ W, W is [in, out])
    w1 = jax.random.normal(k_w1, (C, C_in), jnp.float32) * (1.0 / jnp.sqrt(C))
    w2 = jax.random.normal(k_w2, (C_in, C), jnp.float32) * (1.0 / jnp.sqrt(C_in))
    g1 = jnp.ones((C_in,), jnp.float32)
    b1 = jnp.zeros((C_in,), jnp.float32)
    g2 = jnp.ones((C,), jnp.float32)
    b2 = jnp.zeros((C,), jnp.float32)

    ref = reference_forward(a_hat, x, w1, w2, g1, b1, g2, b2)

    # f32 path with deliberately small tiles: N=300 -> n_pad=384, tile_m=tile_k=128
    # -> 3 row blocks x 3 K blocks, exercising both the K-accumulator and the
    # cross-block BN reduction.
    out = gcn_res_forward(a_hat, x, w1, w2, g1, b1, g2, b2,
                          compute_dtype=jnp.float32,
                          tile_m_max=128, tile_k_max=128, tile_m_ew_max=128)
    out = jax.block_until_ready(out)
    assert out.shape == (N, C)
    assert jnp.allclose(out, ref, atol=5e-4, rtol=5e-4), \
        float(jnp.max(jnp.abs(out - ref)))

    # Default path: bf16-streamed A_hat / features / intermediates, default tiles
    # (f32 MXU accumulation, f32 BN + residual math).
    out_bf16 = gcn_res_forward(a_hat, x, w1, w2, g1, b1, g2, b2)
    out_bf16 = jax.block_until_ready(out_bf16)
    assert out_bf16.shape == (N, C)
    assert float(jnp.max(jnp.abs(out_bf16 - ref))) < 0.15

    print("KERNEL_OK")
</pallas_src>

<mosaic_0001>
module attributes {stable_mosaic.version = 11 : i64} {
  func.func @_agg_kernel_w(%arg0: i32, %arg1: i32, %arg2: memref<128x128xf32, #tpu.memory_space<vmem>>, %arg3: memref<128x128xf32, #tpu.memory_space<vmem>>, %arg4: memref<128x128xf32, #tpu.memory_space<vmem>>, %arg5: memref<128x128xf32, #tpu.memory_space<vmem>>, %arg6: memref<1x1x128xf32, #tpu.memory_space<vmem>>, %arg7: memref<1x1x128xf32, #tpu.memory_space<vmem>>, %arg8: memref<128x128xf32, #tpu.memory_space<vmem>>) attributes {dimension_semantics = [#tpu.dimension_semantics<parallel>, #tpu.dimension_semantics<arbitrary>], iteration_bounds = array<i64: 3, 3>, scalar_prefetch = 0 : i64, scratch_operands = 1 : i64, tpu.core_type = #tpu.core_type<tc>, window_params = [{transform_indices = @transform_0, window_bounds = array<i64: 128, 128>}, {transform_indices = @transform_1, window_bounds = array<i64: 128, 128>}, {pipeline_mode = #tpu.pipeline_mode<synchronous>, transform_indices = @transform_2, window_bounds = array<i64: 128, 128>}, {transform_indices = @transform_3, window_bounds = array<i64: 128, 128>}, {transform_indices = @transform_4, window_bounds = array<i64: 1, 1, 128>}, {transform_indices = @transform_5, window_bounds = array<i64: 1, 1, 128>}]} {
    %c0_i32 = arith.constant 0 : i32
    %0 = arith.cmpi eq, %arg1, %c0_i32 : i32
    %1 = arith.extui %0 : i1 to i32
    %c0_i32_0 = arith.constant 0 : i32
    %2 = arith.cmpi ne, %1, %c0_i32_0 : i32
    scf.if %2 {
      %cst_9 = arith.constant 0.000000e+00 : f32
      %12 = vector.broadcast %cst_9 : f32 to vector<128x128xf32>
      %c0_10 = arith.constant 0 : index
      %c0_11 = arith.constant 0 : index
      %13 = vector.load %arg8[%c0_10, %c0_11] : memref<128x128xf32, #tpu.memory_space<vmem>>, vector<128x128xf32>
      tpu.vector_store %arg8[%c0_10, %c0_11], %12 {strides = array<i32>} : memref<128x128xf32, #tpu.memory_space<vmem>>, vector<128x128xf32>,
    } else {
    }
    %c0 = arith.constant 0 : index
    %c0_1 = arith.constant 0 : index
    %3 = vector.load %arg8[%c0, %c0_1] : memref<128x128xf32, #tpu.memory_space<vmem>>, vector<128x128xf32>
    %c0_2 = arith.constant 0 : index
    %c0_3 = arith.constant 0 : index
    %4 = vector.load %arg2[%c0_2, %c0_3] : memref<128x128xf32, #tpu.memory_space<vmem>>, vector<128x128xf32>
    %c0_4 = arith.constant 0 : index
    %c0_5 = arith.constant 0 : index
    %5 = vector.load %arg3[%c0_4, %c0_5] : memref<128x128xf32, #tpu.memory_space<vmem>>, vector<128x128xf32>
    %cst = arith.constant dense<0.000000e+00> : vector<128x128xf32>
    %6 = tpu.matmul %4, %5, %cst {dimension_numbers = #tpu.dot_dimension_numbers<[1], [0], [0], [1], [0, 0, 1, 1], [], []>} : vector<128x128xf32>, vector<128x128xf32>, vector<128x128xf32> -> vector<128x128xf32>
    %7 = arith.addf %3, %6 : vector<128x128xf32>
    %c0_6 = arith.constant 0 : index
    %c0_7 = arith.constant 0 : index
    %8 = vector.load %arg8[%c0_6, %c0_7] : memref<128x128xf32, #tpu.memory_space<vmem>>, vector<128x128xf32>
    tpu.vector_store %arg8[%c0_6, %c0_7], %7 {strides = array<i32>} : memref<128x128xf32, #tpu.memory_space<vmem>>, vector<128x128xf32>,
    %c2_i32 = arith.constant 2 : i32
    %9 = arith.cmpi eq, %arg1, %c2_i32 : i32
    %10 = arith.extui %9 : i1 to i32
    %c0_i32_8 = arith.constant 0 : i32
    %11 = arith.cmpi ne, %10, %c0_i32_8 : i32
    scf.if %11 {
      %c0_9 = arith.constant 0 : index
      %c0_10 = arith.constant 0 : index
      %12 = vector.load %arg8[%c0_9, %c0_10] : memref<128x128xf32, #tpu.memory_space<vmem>>, vector<128x128xf32>
      %c0_11 = arith.constant 0 : index
      %c0_12 = arith.constant 0 : index
      %13 = vector.load %arg4[%c0_11, %c0_12] : memref<128x128xf32, #tpu.memory_space<vmem>>, vector<128x128xf32>
      %cst_13 = arith.constant dense<0.000000e+00> : vector<128x128xf32>
      %14 = tpu.matmul %12, %13, %cst_13 {dimension_numbers = #tpu.dot_dimension_numbers<[1], [0], [0], [1], [0, 0, 1, 1], [], []>} : vector<128x128xf32>, vector<128x128xf32>, vector<128x128xf32> -> vector<128x128xf32>
      %c0_14 = arith.constant 0 : index
      %c0_15 = arith.constant 0 : index
      %15 = vector.load %arg5[%c0_14, %c0_15] : memref<128x128xf32, #tpu.memory_space<vmem>>, vector<128x128xf32>
      tpu.vector_store %arg5[%c0_14, %c0_15], %14 {strides = array<i32>} : memref<128x128xf32, #tpu.memory_space<vmem>>, vector<128x128xf32>,
      %cst_16 = arith.constant dense<0.000000e+00> : vector<128xf32>
      %16 = vector.multi_reduction <add>, %14, %cst_16 [0] : vector<128x128xf32> to vector<128xf32>
      %17 = vector.shape_cast %16 : vector<128xf32> to vector<1x128xf32>
      %18 = vector.shape_cast %17 : vector<1x128xf32> to vector<1x1x128xf32>
      %c0_17 = arith.constant 0 : index
      %c0_18 = arith.constant 0 : index
      %c0_19 = arith.constant 0 : index
      %19 = vector.load %arg6[%c0_17, %c0_18, %c0_19] : memref<1x1x128xf32, #tpu.memory_space<vmem>>, vector<1x1x128xf32>
      tpu.vector_store %arg6[%c0_17, %c0_18, %c0_19], %18 {strides = array<i32>} : memref<1x1x128xf32, #tpu.memory_space<vmem>>, vector<1x1x128xf32>,
      %20 = arith.mulf %14, %14 : vector<128x128xf32>
      %cst_20 = arith.constant dense<0.000000e+00> : vector<128xf32>
      %21 = vector.multi_reduction <add>, %20, %cst_20 [0] : vector<128x128xf32> to vector<128xf32>
      %22 = vector.shape_cast %21 : vector<128xf32> to vector<1x128xf32>
      %23 = vector.shape_cast %22 : vector<1x128xf32> to vector<1x1x128xf32>
      %c0_21 = arith.constant 0 : index
      %c0_22 = arith.constant 0 : index
      %c0_23 = arith.constant 0 : index
      %24 = vector.load %arg7[%c0_21, %c0_22, %c0_23] : memref<1x1x128xf32, #tpu.memory_space<vmem>>, vector<1x1x128xf32>
      tpu.vector_store %arg7[%c0_21, %c0_22, %c0_23], %23 {strides = array<i32>} : memref<1x1x128xf32, #tpu.memory_space<vmem>>, vector<1x1x128xf32>,
    } else {
    }
    return
  }
  func.func @transform_0(%arg0: i32, %arg1: i32) -> (i32, i32) {
    %c0_i32 = arith.constant 0 : i32
    return %arg0, %arg1 : i32, i32
  }
  func.func @transform_1(%arg0: i32, %arg1: i32) -> (i32, i32) {
    %c0_i32 = arith.constant 0 : i32
    %c0_i32_0 = arith.constant 0 : i32
    return %arg1, %c0_i32 : i32, i32
  }
  func.func @transform_2(%arg0: i32, %arg1: i32) -> (i32, i32) {
    %c0_i32 = arith.constant 0 : i32
    %c0_i32_0 = arith.constant 0 : i32
    %c0_i32_1 = arith.constant 0 : i32
    return %c0_i32, %c0_i32_0 : i32, i32
  }
  func.func @transform_3(%arg0: i32, %arg1: i32) -> (i32, i32) {
    %c0_i32 = arith.constant 0 : i32
    %c0_i32_0 = arith.constant 0 : i32
    return %arg0, %c0_i32 : i32, i32
  }
  func.func @transform_4(%arg0: i32, %arg1: i32) -> (i32, i32, i32) {
    %c0_i32 = arith.constant 0 : i32
    %c0_i32_0 = arith.constant 0 : i32
    %c0_i32_1 = arith.constant 0 : i32
    return %arg0, %c0_i32, %c0_i32_0 : i32, i32, i32
  }
  func.func @transform_5(%arg0: i32, %arg1: i32) -> (i32, i32, i32) {
    %c0_i32 = arith.constant 0 : i32
    %c0_i32_0 = arith.constant 0 : i32
    %c0_i32_1 = arith.constant 0 : i32
    return %arg0, %c0_i32, %c0_i32_0 : i32, i32, i32
  }
}

</mosaic_0001>

<bundles_post_ra>
// kernel: tpu_custom_call.1
= control target key start
LH: loop header
LB: loop body
LE: loop exit
PB: predicated region body
PF: predicated region fallthrough
CT: control target
= control target key end

     0   :  { %s2232_s0 = inlined_call_operand.hbm [shape: f32[384,384], index: 0, kind: input, shape index: {}]   ;;  %s2233_s1 = inlined_call_operand.hbm [shape: f32[384,128], index: 1, kind: input, shape index: {}]   ;;  %s2234_s2 = inlined_call_operand.hbm [shape: f32[128,128], index: 2, kind: input, shape index: {}]   ;;  %s2235_s3 = inlined_call_operand.hbm [shape: f32[384,128], index: 3, kind: output, shape index: {0}]   ;;  %s2236_s4 = inlined_call_operand.hbm [shape: f32[3,1,128], index: 4, kind: output, shape index: {1}]   ;;  %s2237_s5 = inlined_call_operand.hbm [shape: f32[3,1,128], index: 5, kind: output, shape index: {2}]  }
   0x1   :  { %2264 = sst [smem:[#allocation28_spill]] %s2232_s0 }
   0x2   :  { %2265 = sst [smem:[#allocation29_spill]] %s2233_s1 }
   0x3   :  { %2266 = sst [smem:[#allocation30_spill]] %s2234_s2 }
   0x4   :  { %2267 = sst [smem:[#allocation31_spill]] %s2235_s3 }
   0x5   :  { %2268 = sst [smem:[#allocation32_spill]] %s2236_s4 }
   0x6   :  { %2269 = sst [smem:[#allocation33_spill]] %s2237_s5 }
   0x7   :  { %11 = vsyncpa [#allocation4], 0 }
   0x8   :  { %13 = vsyncpa [#allocation4 + $0x1], 0 }
   0x9   :  { %14 = vsyncpa [#allocation7], 0 }
   0xa   :  { %16 = vsyncpa [#allocation7 + $0x1], 0 }
   0xb   :  { %17 = vsyncpa [#allocation5], 0 }
   0xc   :  { %19 = vsyncpa [#allocation5 + $0x1], 0 }
   0xd   :  { %20 = vsyncpa [#allocation11], 0 }
   0xe   :  { %22 = vsyncpa [#allocation11 + $0x1], 0  ;;  %s1814_s18 = smov 0   ;;  %s1816_s19 = smov 0  }
   0xf   :  { %s1818_s20 = smov 0   ;;  %s1820_s21 = smov 0  }
  0x10   :  { %s1822_s22 = smov 0   ;;  %s1824_s23 = smov 0  }
  0x11   :  { %s1826_s24 = smov 0   ;;  %s1828_s25 = smov 0  }
  0x12   :  { %s1830_s26 = smov 0   ;;  %s1832_s27 = smov 0  }
  0x13   :  { %s1834_s28 = smov 0   ;;  %s1836_s29 = smov 0  }
  0x14   :  { %s1838_s30 = smov 0   ;;  %s1840_s6 = smov 0  }
  0x15 LB: > { %2270 = sst [smem:[#allocation18_spill]] %s1718_s18  ;;  %s1881_s7 = sadd.s32 4294967295, %s1770_s6   ;;  %s1770_s6 = sphi %s1840_s6, %s28_s6   ;;  %s1766_s30 = sphi %s1838_s30, %s2331_s30   ;;  %s1762_s29 = sphi %s1836_s29, %s2330_s29   ;;  %s1758_s28 = sphi %s1834_s28, %s2329_s28   ;;  %s1754_s27 = sphi %s1832_s27, %s2328_s27   ;;  %s1750_s26 = sphi %s1830_s26, %s2327_s26   ;;  %s1746_s25 = sphi %s1828_s25, %s2326_s25   ;;  %s1742_s24 = sphi %s1826_s24, %s2325_s24   ;;  %s1738_s23 = sphi %s1824_s23, %s2324_s23   ;;  %s1734_s22 = sphi %s1822_s22, %s2323_s22   ;;  %s1730_s21 = sphi %s1820_s21, %s2322_s21   ;;  %s1726_s20 = sphi %s1818_s20, %s2321_s20   ;;  %s1722_s19 = sphi %s1816_s19, %s2320_s19   ;;  %s1718_s18 = sphi %s1814_s18, %s2317_s18  }
  0x16   : > { %2271 = sst [smem:[#allocation19_spill]] %s1722_s19  ;;  %s2240_s8 = sadd.s32 4294967294, %s1770_s6  }
  0x17   : > { %2272 = sst [smem:[#allocation20_spill]] %s1754_s27  ;;  %p62_p0 = scmp.ne.s32.totalorder %s1746_s25, %s1742_s24 }
  0x18   : > { %2273 = sst [smem:[#allocation21_spill]] %s1758_s28  ;;  %p2259_p1 = scmp.eq.s32.totalorder %s1881_s7, 0 }
  0x19   : > { %2274 = sst [smem:[#allocation22_spill]] %s1881_s7  ;;  %p88_p2 = scmp.ne.s32.totalorder %s1734_s22, %s1730_s21 }
  0x1a   : > { %p1890_p3 = por %p2259_p1, %p62_p0  ;;  %p132_p4 = scmp.ne.s32.totalorder %s1726_s20, %s1722_s19 }
  0x1b   : > { %p1898_p5 = por %p88_p2, %p2259_p1  ;;  %p133_p6 = scmp.eq.s32.totalorder %s1881_s7, 8 }
  0x1c   : > { %p138_p7 = scmp.ne.s32.totalorder %s1722_s19, %s1718_s18  ;;  %p139_p8 = scmp.eq.s32.totalorder %s2240_s8, 8 }
  0x1d   : > { %s2276_s11 = scalar_select %p1898_p5, 1, 0 }
  0x1e   : > { %p1907_p9 = por %p133_p6, %p132_p4  ;;  %p1055_p10 = scmp.ge.s32.totalorder %s1770_s6, 1 }
  0x1f   : > { %2277 = sst [smem:[#allocation23_spill]] %s2276_s11  ;;  %p1912_p11 = por %p139_p8, %p138_p7 }
  0x20   : > { %s2278_s12 = scalar_select %p1907_p9, 1, 0 }
  0x21   : > { %s2280_s13 = scalar_select %p1912_p11, 1, 0 }
  0x22   : > { %2279 = sst [smem:[#allocation24_spill]] %s2278_s12  ;;  %p198_p12 = scmp.lt.s32.totalorder %s1770_s6, 10 }
  0x23   : > { %2281 = sst [smem:[#allocation25_spill]] %s2280_s13  ;;  %s1772_s15 = smov [#allocation8]  }
  0x24   : > { %p1917_p13 = pnand %p1055_p10, %p198_p12  ;;  %s210_s16 = sshll.u32 %s1772_s15, 4  ;;  %s211_s16 = int_to_ptr.vmem [resolvable:$true] %s210_s16 }
  0x25   : > { %s1491_s17 = scalar_lea.vmem %s211_s16, 2048  ;;  %p1499_p9 = scmp.lt.s32.totalorder %s211_s16, %s211_s16 }
  0x26   : > { %p1336_p0 = pneg %p1917_p13  ;;  %p1492_p6 = scmp.ne.s32.totalorder %s211_s16, %s1491_s17 }
  0x27   : > { %p1500_p11 = scmp.lt.s32.totalorder %s1491_s17, %s1491_s17 }
  0x28   : > { %p1337_p2 = pnand %p1336_p0, %p2259_p1 }
  0x29   : > { %p1501_p5 = por %p1500_p11, %p1499_p9 }
  0x2a   : > { %p1482_p4 = pneg %p1337_p2 }
  0x2c   : > { %p1494_p7 = pnand %p1492_p6, %p1482_p4 }
  0x2e   : > { %p1495_p8 = pneg %p1494_p7 }
  0x30   : > { %p1502_p10 = pnand %p1501_p5, %p1495_p8 }
  0x32   : > { %1505 = shalt.err (!%p1502_p10)
}
  0x33   : > { %s2243_s21 = smov 128   ;;  %s2245_s24 = smov 8  }
  0x34   : > { %s2283_s2 = sld [smem:[#allocation30_spill]]  ;;  %s37_s8 = sadd.s32 1, %s1762_s29 }
  0x35   : > { %p38_p5 = scmp.ge.s32.totalorder %s37_s8, 3  ;;  %s40_s9 = sadd.s32 1, %s1766_s30 }
  0x36   : > { %s49_s13 = sadd.s32 1, %s1750_s26  ;;  %p56_p9 = scmp.ne.s32.totalorder %s1750_s26, %s1746_s25 }
  0x37   : > { %s2333_s8 = smov (%p38_p5, %s37_s8), 0  ;;  %s2335_s9 = smov (!%p38_p5, %s40_s9), %s1766_s30 }
  0x38   : > { %2284 = sst [smem:[#allocation26_spill]] %s2333_s8  ;;  %s1941_s18 = ssub.s32 %s1762_s29, %s2333_s8 }
  0x39   : > { %p57_p11 = scmp.eq.s32.totalorder %s1770_s6, 0  ;;  %p42_p12 = scmp.ge.s32.totalorder %s2335_s9, 3 }
  0x3a   : > { %1339 = dma.hbm_to_vmem [thread:$0]  (!%p1337_p2), %s2283_s2, 2048, %s211_s16, [#allocation7], %s2243_s21, %s2243_s21, %s2245_s24  }
  0x3b   : > { %p73_p0 = scmp.eq.s32.totalorder %s1941_s18, 0  ;;  %p1947_p2 = por %p57_p11, %p56_p9 }
  0x3c   : > { %p1358_p4 = scmp.lt.s32.totalorder %s1770_s6, 9  ;;  %s2337_s9 = smov (%p42_p12, %s2335_s9), 0 }
  0x3d   : > { %2286 = sst [smem:[#allocation27_spill]] %s2337_s9  ;;  %s224_s15 = sand.u32 1, %s1750_s26  }
  0x3e   : > { %s1321_s17 = smul.u32 48, %s1766_s30  ;;  %s44_s21 = ssub.s32 %s1766_s30, %s2337_s9 }
  0x3f   : > { %s46_s24 = sor.u32 %s1941_s18, %s44_s21  ;;  %p120_p6 = scmp.eq.s32.totalorder %s44_s21, 0 }
  0x40   : > { %p47_p7 = scmp.eq.s32.totalorder %s46_s24, 0  ;;  %s1058_s2 = sshll.u32 %s224_s15, 7 }
  0x41   : > { %s2287_s8 = sadd.s32 1, %s1726_s20  ;;  %s234_s4 = sadd.s32 %s1762_s29, %s1321_s17 }
  0x42   : > { %s1962_s5 = scalar_select %p120_p6, %s1726_s20, %s2287_s8  }
  0x43   : > { %s1965_s3 = scalar_select %p47_p7, %s1750_s26, %s49_s13  }
  0x44   : > { %s1061_s12 = sshll.u32 %s234_s4, 7  ;;  %s228_s28 = scalar_lea.vmem [#allocation3], %s1058_s2 }
  0x45   : > { %s237_s27 = sshll.u32 %s228_s28, 4  ;;  %s2288_s0 = sld [smem:[#allocation28_spill]]  ;;  %s238_s27 = int_to_ptr.vmem [resolvable:$true] %s237_s27 }
  0x46   : > { %p1975_p8 = pnand %p1358_p4, %p1947_p2  ;;  %s225_s24 = scalar_lea.sflag [#allocation4], %s224_s15 }
  0x47   : > { %s1519_s13 = scalar_lea.vmem %s238_s27, 2048  ;;  %s1775_s2 = smov [#allocation3]  }
  0x48   : > { %p1508_p10 = pneg %p1975_p8  ;;  %p1520_p5 = scmp.ne.s32.totalorder %s238_s27, %s1519_s13 }
  0x49   : > { %s1524_s4 = sshll.u32 %s1775_s2, 4  ;;  %s1525_s4 = int_to_ptr.vmem [resolvable:$false] %s1524_s4 }
  0x4a   : > { %p1522_p9 = pnand %p1520_p5, %p1508_p10  ;;  %s1526_s19 = scalar_lea.vmem %s1525_s4, 4096 }
  0x4b   : > { %s236_s7 = scalar_lea.hbm %s2288_s0, %s1061_s12  ;;  %p1527_p6 = scmp.lt.s32.totalorder %s238_s27, %s1525_s4 }
  0x4c   : > { %p1523_p12 = pneg %p1522_p9  ;;  %p1528_p7 = scmp.lt.s32.totalorder %s1526_s19, %s1519_s13 }
  0x4e   : > { %p1529_p1 = por %p1528_p7, %p1527_p6 }
  0x50   : > { %p1530_p2 = pnand %p1529_p1, %p1523_p12 }
  0x52   : > { %1533 = shalt.err (!%p1530_p2)
}
  0x53   : > { %s1776_s28 = smov 384   ;;  %s2290_s11 = smov 8  }
  0x54   : > { %s2291_s12 = smov 128   ;;  %s75_s16 = sadd.s32 1, %s1738_s23 }
  0x55   : > { %1343 = dma.hbm_to_vmem [thread:$0]  (!%p1975_p8), %s236_s7, 2048, %s238_s27, %s225_s24, %s1776_s28, %s2291_s12, %s2290_s11  }
  0x56   : > { %p82_p10 = scmp.ne.s32.totalorder %s1738_s23, %s1734_s22  ;;  %s249_s17 = sand.u32 1, %s1738_s23  }
  0x57   : > { %s1992_s15 = scalar_select %p73_p0, %s1738_s23, %s75_s16  }
  0x58   : > { %p84_p1 = por %p82_p10, %p57_p11  ;;  %s1079_s21 = sshll.u32 %s1762_s29, 11 }
  0x59   : > { %s1062_s13 = sshll.u32 %s249_s17, 7  ;;  %s2292_s1 = sld [smem:[#allocation29_spill]] }
  0x5a   : > { %p2003_p5 = pnand %p1358_p4, %p84_p1  ;;  %s251_s27 = scalar_lea.vmem [#allocation6], %s1062_s13 }
  0x5b   : > { %s258_s7 = sshll.u32 %s251_s27, 4  ;;  %s2294_s18 = sand.u32 1, %s1770_s6   ;;  %s259_s7 = int_to_ptr.vmem [resolvable:$true] %s258_s7 }
  0x5c   : > { %s248_s24 = scalar_lea.sflag [#allocation7], %s2294_s18  ;;  %p1536_p11 = pneg %p2003_p5 }
  0x5d   : > { %s1547_s28 = scalar_lea.vmem %s259_s7, 2048  ;;  %s1777_s16 = smov [#allocation6]  }
  0x5e   : > { %p1548_p0 = scmp.ne.s32.totalorder %s259_s7, %s1547_s28  ;;  %s1552_s17 = sshll.u32 %s1777_s16, 4  ;;  %s1553_s17 = int_to_ptr.vmem [resolvable:$false] %s1552_s17 }
  0x5f   : > { %s257_s19 = scalar_lea.hbm %s2292_s1, %s1079_s21  ;;  %s1554_s21 = scalar_lea.vmem %s1553_s17, 4096 }
  0x60   : > { %p1550_p8 = pnand %p1548_p0, %p1536_p11  ;;  %p1555_p4 = scmp.lt.s32.totalorder %s259_s7, %s1553_s17 }
  0x61   : > { %p1556_p12 = scmp.lt.s32.totalorder %s1554_s21, %s1547_s28 }
  0x62   : > { %p1551_p9 = pneg %p1550_p8 }
  0x63   : > { %p1557_p6 = por %p1556_p12, %p1555_p4 }
  0x65   : > { %p1558_p7 = pnand %p1557_p6, %p1551_p9 }
  0x67   : > { %1561 = shalt.err (!%p1558_p7)
}
  0x68   : > { %1346 = dma.hbm_to_vmem [thread:$0]  (!%p2003_p5), %s257_s19, 2048, %s259_s7, %s248_s24, %s2291_s12, %s2291_s12, %s2290_s11  }
  0x69   : > { %270 = sbr.rel (%p1917_p13) target bundleno = 743 (0x2e7), region = 32  ;;  %s272_s13 = sand.u32 (!%p1917_p13), 1, %s1746_s25  }
  0x6a   : > { %s1066_s2 = sshll.u32 (!%p1917_p13), %s272_s13, 7  ;;  %s273_s4 = scalar_lea.sflag (!%p1917_p13), [#allocation4], %s272_s13 }
  0x6b   : > { %s2019_s27 = scalar_lea.vmem (!%p1917_p13), [#allocation3], %s1066_s2 }
  0x6e   : > { %1697 = dma.done.wait (%p1890_p3), %s273_s4, 2048  }
  0x6f   : > { %1699 = vsyncadd (%p1890_p3), %s273_s4, 4294965248  ;;  %s2295_s8 = sld [smem:[#allocation22_spill]]  ;;  %s283_s12 = sand.u32 1, %s1734_s22  }
  0x70   : > { %s2296_s18 = sld [smem:[#allocation23_spill]]  ;;  %s1067_s14 = sshll.u32 %s283_s12, 7 }
  0x71   : > { %s2029_s7 = scalar_lea.vmem [#allocation6], %s1067_s14 }
  0x75   : > { %s281_s11 = sand.u32 1, %s2295_s8  }
  0x76   : > { %s282_s19 = scalar_lea.sflag [#allocation7], %s281_s11  ;;  %p2297_p13 = scmp.ne.s32.totalorder %s2296_s18, 0 }
  0x78   : > { %1701 = dma.done.wait (%p2297_p13), %s282_s19, 2048  }
  0x79   : > { %1703 = vsyncadd (%p2297_p13), %s282_s19, 4294965248  ;;  %p2298_p2 = scmp.eq.s32.totalorder %s2295_s8, 0 }
  0x7b   : > { %1705 = dma.done.wait (%p2298_p2), [#allocation7], 2048   ;;  %p2299_p3 = pmov %p2298_p2 }
  0x7c   : > { %s2300_s10 = sld [smem:[#allocation19_spill]] }
  0x7d   : > { %1707 = vsyncadd (%p2299_p3), [#allocation7], 4294965248  ;;  %s2301_s13 = sld [smem:[#allocation20_spill]] }
  0x82   : > { %s2040_s24 = sand.u32 1, %s2300_s10  }
  0x83   : > { %s1069_s28 = sshll.u32 %s2040_s24, 7  ;;  %s322_s17 = scalar_lea.vmem [#allocation10], %s2040_s24 }
  0x84   : > { %s2043_s16 = scalar_lea.vmem [#allocation9], %s1069_s28  ;;  %s2260_s21 = scalar_lea.vmem [#allocation12], %s2040_s24 }
  0x85   : > { %p1070_p10 = scmp.ne.s32.totalorder %s2301_s13, 0 }
  0x87   : > { %335 = sbr.rel (%p1070_p10) target bundleno = 149 (0x95), region = 48 }
  0x8c   : > { %v1778_v0 = vmov 0.0  }
  0x8d   : > { %336 = vst [vmem:[#allocation2 + $0x30] sm:$0xff] %v1778_v0  ;;  %337 = vst [vmem:[#allocation2] sm:$0xff] %v1778_v0 }
  0x8e   : > { %338 = vst [vmem:[#allocation2 + $0x58] sm:$0xff] %v1778_v0  ;;  %339 = vst [vmem:[#allocation2 + $0x18] sm:$0xff] %v1778_v0 }
  0x8f   : > { %340 = vst [vmem:[#allocation2 + $0x50] sm:$0xff] %v1778_v0  ;;  %341 = vst [vmem:[#allocation2 + $0x68] sm:$0xff] %v1778_v0 }
  0x90   : > { %342 = vst [vmem:[#allocation2 + $0x8] sm:$0xff] %v1778_v0  ;;  %343 = vst [vmem:[#allocation2 + $0x48] sm:$0xff] %v1778_v0 }
  0x91   : > { %344 = vst [vmem:[#allocation2 + $0x40] sm:$0xff] %v1778_v0  ;;  %345 = vst [vmem:[#allocation2 + $0x20] sm:$0xff] %v1778_v0 }
  0x92   : > { %346 = vst [vmem:[#allocation2 + $0x10] sm:$0xff] %v1778_v0  ;;  %347 = vst [vmem:[#allocation2 + $0x38] sm:$0xff] %v1778_v0 }
  0x93   : > { %348 = vst [vmem:[#allocation2 + $0x60] sm:$0xff] %v1778_v0  ;;  %349 = vst [vmem:[#allocation2 + $0x70] sm:$0xff] %v1778_v0 }
  0x94   : > { %350 = vst [vmem:[#allocation2 + $0x78] sm:$0xff] %v1778_v0  ;;  %351 = vst [vmem:[#allocation2 + $0x28] sm:$0xff] %v1778_v0 }
  0x95 PF: > { %v399_v1 = vld [vmem:[%s2029_s7 + $0x78] sm:$0xff]  ;;  %v398_v2 = vld [vmem:[%s2029_s7 + $0x70] sm:$0xff]  ;;  %v397_v3 = vld [vmem:[%s2029_s7 + $0x68] sm:$0xff]  ;;  %s2302_s2 = sld [smem:[#allocation20_spill]] }
  0x96   : > { %1145 = vmatprep.subr.mxu0 %v399_v1  ;;  %1257 = vmatprep.subr.mxu1 %v399_v1  ;;  %v396_v4 = vld [vmem:[%s2029_s7 + $0x60] sm:$0xff]  ;;  %v395_v5 = vld [vmem:[%s2029_s7 + $0x58] sm:$0xff]  ;;  %v394_v6 = vld [vmem:[%s2029_s7 + $0x50] sm:$0xff] }
  0x97   : > { %1146 = vmatpush3.msra.mxu0 %v399_v1  ;;  %1273 = vmatpush3.msra.mxu1 %v399_v1  ;;  %v393_v7 = vld [vmem:[%s2029_s7 + $0x48] sm:$0xff]  ;;  %v392_v8 = vld [vmem:[%s2029_s7 + $0x40] sm:$0xff]  ;;  %v391_v9 = vld [vmem:[%s2029_s7 + $0x38] sm:$0xff] }
  0x98   : > { %1147 = vmatprep.subr.mxu0 %v398_v2  ;;  %1258 = vmatprep.subr.mxu1 %v398_v2  ;;  %v390_v10 = vld [vmem:[%s2029_s7 + $0x30] sm:$0xff]  ;;  %v389_v11 = vld [vmem:[%s2029_s7 + $0x28] sm:$0xff]  ;;  %v388_v12 = vld [vmem:[%s2029_s7 + $0x20] sm:$0xff] }
  0x99   : > { %1148 = vmatpush3.msra.mxu0 %v398_v2  ;;  %1274 = vmatpush3.msra.mxu1 %v398_v2  ;;  %v387_v13 = vld [vmem:[%s2029_s7 + $0x18] sm:$0xff]  ;;  %v386_v14 = vld [vmem:[%s2029_s7 + $0x10] sm:$0xff]  ;;  %v385_v15 = vld [vmem:[%s2029_s7 + $0x8] sm:$0xff] }
  0x9a   : > { %1149 = vmatprep.subr.mxu0 %v397_v3  ;;  %1259 = vmatprep.subr.mxu1 %v397_v3  ;;  %v384_v16 = vld [vmem:[%s2029_s7] sm:$0xff]  ;;  %v369_v19 = vld [vmem:[%s2019_s27 + $0x8] sm:$0xff]  ;;  %v370_v21 = vld [vmem:[%s2019_s27 + $0x10] sm:$0xff] }
  0x9b   : > { %1150 = vmatpush3.msra.mxu0 %v397_v3  ;;  %1275 = vmatpush3.msra.mxu1 %v397_v3  ;;  %v368_v17 = vld [vmem:[%s2019_s27] sm:$0xff]  ;;  %v377_v20 = vld [vmem:[%s2019_s27 + $0x48] sm:$0xff]  ;;  %v378_v22 = vld [vmem:[%s2019_s27 + $0x50] sm:$0xff]  ;;  %p1071_p1 = scmp.ne.s32.totalorder %s2302_s2, 2 }
  0x9c   : > { %1151 = vmatprep.subr.mxu0 %v396_v4  ;;  %1260 = vmatprep.subr.mxu1 %v396_v4  ;;  %v376_v18 = vld [vmem:[%s2019_s27 + $0x40] sm:$0xff]  ;;  %v371_v23 = vld [vmem:[%s2019_s27 + $0x18] sm:$0xff]  ;;  %v373_v27 = vld [vmem:[%s2019_s27 + $0x28] sm:$0xff] }
  0x9d   : > { %1152 = vmatpush3.msra.mxu0 %v396_v4  ;;  %1276 = vmatpush3.msra.mxu1 %v396_v4  ;;  %v379_v24 = vld [vmem:[%s2019_s27 + $0x58] sm:$0xff]  ;;  %v372_v25 = vld [vmem:[%s2019_s27 + $0x20] sm:$0xff]  ;;  %v381_v28 = vld [vmem:[%s2019_s27 + $0x68] sm:$0xff] }
  0x9e   : > { %1153 = vmatprep.subr.mxu0 %v395_v5  ;;  %1261 = vmatprep.subr.mxu1 %v395_v5  ;;  %v380_v26 = vld [vmem:[%s2019_s27 + $0x60] sm:$0xff]  ;;  %v374_v29 = vld [vmem:[%s2019_s27 + $0x30] sm:$0xff]  ;;  %v375_v31 = vld [vmem:[%s2019_s27 + $0x38] sm:$0xff] }
  0x9f   : > { %1154 = vmatpush3.msra.mxu0 %v395_v5  ;;  %1277 = vmatpush3.msra.mxu1 %v395_v5  ;;  %v382_v30 = vld [vmem:[%s2019_s27 + $0x70] sm:$0xff]  ;;  %v383_v32 = vld [vmem:[%s2019_s27 + $0x78] sm:$0xff]  ;;  %v353_v33 = vld [vmem:[#allocation2] sm:$0xff] }
  0xa0   : > { %1155 = vmatprep.subr.mxu0 %v394_v6  ;;  %1262 = vmatprep.subr.mxu1 %v394_v6  ;;  %v361_v34 = vld [vmem:[#allocation2 + $0x20] sm:$0xff]  ;;  %v352_v37 = vld [vmem:[#allocation2 + $0x30] sm:$0xff]  ;;  %v355_v43 = vld [vmem:[#allocation2 + $0x18] sm:$0xff] }
  0xa1   : > { %1156 = vmatpush3.msra.mxu0 %v394_v6  ;;  %1278 = vmatpush3.msra.mxu1 %v394_v6  ;;  %v360_v38 = vld [vmem:[#allocation2 + $0x40] sm:$0xff]  ;;  %v363_v44 = vld [vmem:[#allocation2 + $0x38] sm:$0xff]  ;;  %v362_v50 = vld [vmem:[#allocation2 + $0x10] sm:$0xff] }
  0xa2   : > { %1157 = vmatprep.subr.mxu0 %v393_v7  ;;  %1263 = vmatprep.subr.mxu1 %v393_v7  ;;  %v354_v49 = vld [vmem:[#allocation2 + $0x58] sm:$0xff]  ;;  %v357_v55 = vld [vmem:[#allocation2 + $0x68] sm:$0xff]  ;;  %v365_v56 = vld [vmem:[#allocation2 + $0x70] sm:$0xff] }
  0xa3   : > { %1158 = vmatpush3.msra.mxu0 %v393_v7  ;;  %1279 = vmatpush3.msra.mxu1 %v393_v7  ;;  %v356_v61 = vld [vmem:[#allocation2 + $0x50] sm:$0xff]  ;;  %v364_v62 = vld [vmem:[#allocation2 + $0x60] sm:$0xff]  ;;  %v359_v3 = vld [vmem:[#allocation2 + $0x48] sm:$0xff] }
  0xa4   : > { %1159 = vmatprep.subr.mxu0 %v392_v8  ;;  %1264 = vmatprep.subr.mxu1 %v392_v8  ;;  %v367_v4 = vld [vmem:[#allocation2 + $0x28] sm:$0xff] }
  0xa5   : > { %1160 = vmatpush3.msra.mxu0 %v392_v8  ;;  %1280 = vmatpush3.msra.mxu1 %v392_v8 }
  0xa6   : > { %1161 = vmatprep.subr.mxu0 %v391_v9  ;;  %1265 = vmatprep.subr.mxu1 %v391_v9 }
  0xa7   : > { %1162 = vmatpush3.msra.mxu0 %v391_v9  ;;  %1281 = vmatpush3.msra.mxu1 %v391_v9  ;;  %v358_v9 = vld [vmem:[#allocation2 + $0x8] sm:$0xff] }
  0xa8   : > { %1163 = vmatprep.subr.mxu0 %v390_v10  ;;  %1266 = vmatprep.subr.mxu1 %v390_v10 }
  0xa9   : > { %1164 = vmatpush3.msra.mxu0 %v390_v10  ;;  %1282 = vmatpush3.msra.mxu1 %v390_v10  ;;  %v366_v10 = vld [vmem:[#allocation2 + $0x78] sm:$0xff] }
  0xaa   : > { %1165 = vmatprep.subr.mxu0 %v389_v11  ;;  %1267 = vmatprep.subr.mxu1 %v389_v11 }
  0xab   : > { %1166 = vmatpush3.msra.mxu0 %v389_v11  ;;  %1283 = vmatpush3.msra.mxu1 %v389_v11 }
  0xac   : > { %1167 = vmatprep.subr.mxu0 %v388_v12  ;;  %1268 = vmatprep.subr.mxu1 %v388_v12 }
  0xad   : > { %1168 = vmatpush3.msra.mxu0 %v388_v12  ;;  %1284 = vmatpush3.msra.mxu1 %v388_v12 }
  0xae   : > { %1169 = vmatprep.subr.mxu0 %v387_v13  ;;  %1269 = vmatprep.subr.mxu1 %v387_v13 }
  0xaf   : > { %1170 = vmatpush3.msra.mxu0 %v387_v13  ;;  %1285 = vmatpush3.msra.mxu1 %v387_v13 }
  0xb0   : > { %1171 = vmatprep.subr.mxu0 %v386_v14  ;;  %1270 = vmatprep.subr.mxu1 %v386_v14 }
  0xb1   : > { %1172 = vmatpush3.msra.mxu0 %v386_v14  ;;  %1286 = vmatpush3.msra.mxu1 %v386_v14 }
  0xb2   : > { %1173 = vmatprep.subr.mxu0 %v385_v15  ;;  %1271 = vmatprep.subr.mxu1 %v385_v15 }
  0xb3   : > { %1174 = vmatpush3.msra.mxu0 %v385_v15  ;;  %1287 = vmatpush3.msra.mxu1 %v385_v15 }
  0xb4   : > { %1175 = vmatprep.subr.mxu0 %v384_v16  ;;  %1272 = vmatprep.subr.mxu1 %v384_v16 }
  0xb5   : > { %1176 = vmatpush3.msra.mxu0 %v384_v16  ;;  %1288 = vmatpush3.msra.mxu1 %v384_v16 }
  0xb6   : > { %1177 = vmatprep.mubr.f32.mxu0 %v368_v17  ;;  %1189 = vmatprep.mubr.f32.mxu1 %v376_v18 }
  0xb7   : > { %1178 = vmatmul.mubr.f32.vlgmr.msra.gmra.mxu0 %v369_v19  ;;  %1190 = vmatmul.mubr.f32.vlgmr.msra.gmra.mxu1 %v377_v20 }
  0xb8   : > { %1180 = vmatprep.mubr.f32.mxu0 %v370_v21  ;;  %1192 = vmatprep.mubr.f32.mxu1 %v378_v22 }
  0xbb   : > { %1181 = vmatmul.mubr.f32.gmra.mxu0 %v371_v23  ;;  %1193 = vmatmul.mubr.f32.gmra.mxu1 %v379_v24 }
  0xbc   : > { %1183 = vmatprep.mubr.f32.mxu0 %v372_v25  ;;  %1195 = vmatprep.mubr.f32.mxu1 %v380_v26 }
  0xbf   : > { %1184 = vmatmul.mubr.f32.gmra.mxu0 %v373_v27  ;;  %1196 = vmatmul.mubr.f32.gmra.mxu1 %v381_v28 }
  0xc0   : > { %1186 = vmatprep.mubr.f32.mxu0 %v374_v29  ;;  %1198 = vmatprep.mubr.f32.mxu1 %v382_v30 }
  0xc3   : > { %1187 = vmatmul.mubr.f32.gmra.mxu0 %v375_v31  ;;  %1199 = vmatmul.mubr.f32.gmra.mxu1 %v383_v32 }
 0x177   : > { %v1179_v35 = vpop.f32.mrf.mxu0  ;;  %v1191_v36 = vpop.f32.mrf.mxu1 }
 0x178   : > { %v546_v39 = vadd.f32 %v1179_v35, %v353_v33  ;;  %v554_v40 = vadd.f32 %v1191_v36, %v361_v34 }
 0x179   : > { %v466_v41 = vpop.f32.mrf.mxu0  ;;  %v506_v42 = vpop.f32.mrf.mxu1 }
 0x17a   : > { %562 = vst [vmem:[#allocation2] sm:$0xff] %v546_v39  ;;  %570 = vst [vmem:[#allocation2 + $0x20] sm:$0xff] %v554_v40  ;;  %v545_v45 = vadd.f32 %v466_v41, %v352_v37  ;;  %v553_v46 = vadd.f32 %v506_v42, %v360_v38 }
 0x17b   : > { %v1182_v47 = vpop.f32.mrf.mxu0  ;;  %v1194_v48 = vpop.f32.mrf.mxu1 }
 0x17c   : > { %561 = vst [vmem:[#allocation2 + $0x30] sm:$0xff] %v545_v45  ;;  %569 = vst [vmem:[#allocation2 + $0x40] sm:$0xff] %v553_v46  ;;  %v548_v51 = vadd.f32 %v1182_v47, %v355_v43  ;;  %v556_v52 = vadd.f32 %v1194_v48, %v363_v44 }
 0x17d   : > { %v476_v53 = vpop.f32.mrf.mxu0  ;;  %v516_v54 = vpop.f32.mrf.mxu1 }
 0x17e   : > { %564 = vst [vmem:[#allocation2 + $0x18] sm:$0xff] %v548_v51  ;;  %572 = vst [vmem:[#allocation2 + $0x38] sm:$0xff] %v556_v52  ;;  %v547_v57 = vadd.f32 %v476_v53, %v354_v49  ;;  %v555_v58 = vadd.f32 %v516_v54, %v362_v50 }
 0x17f   : > { %v1185_v59 = vpop.f32.mrf.mxu0  ;;  %v1197_v60 = vpop.f32.mrf.mxu1 }
 0x180   : > { %563 = vst [vmem:[#allocation2 + $0x58] sm:$0xff] %v547_v57  ;;  %571 = vst [vmem:[#allocation2 + $0x10] sm:$0xff] %v555_v58  ;;  %v550_v63 = vadd.f32 %v1185_v59, %v357_v55  ;;  %v558_v0 = vadd.f32 %v1197_v60, %v365_v56 }
 0x181   : > { %v486_v1 = vpop.f32.mrf.mxu0  ;;  %v526_v2 = vpop.f32.mrf.mxu1 }
 0x182   : > { %566 = vst [vmem:[#allocation2 + $0x68] sm:$0xff] %v550_v63  ;;  %574 = vst [vmem:[#allocation2 + $0x70] sm:$0xff] %v558_v0  ;;  %v549_v5 = vadd.f32 %v486_v1, %v356_v61  ;;  %v557_v6 = vadd.f32 %v526_v2, %v364_v62 }
 0x183   : > { %v1188_v7 = vpop.f32.mrf.mxu0  ;;  %v1200_v8 = vpop.f32.mrf.mxu1 }
 0x184   : > { %565 = vst [vmem:[#allocation2 + $0x50] sm:$0xff] %v549_v5  ;;  %573 = vst [vmem:[#allocation2 + $0x60] sm:$0xff] %v557_v6  ;;  %v552_v11 = vadd.f32 %v1188_v7, %v359_v3  ;;  %v560_v12 = vadd.f32 %v1200_v8, %v367_v4  ;;  %580 = sbr.rel (%p1071_p1) target bundleno = 668 (0x29c), region = 52 }
 0x185   : > { %v496_v13 = vpop.f32.mrf.mxu0  ;;  %v536_v14 = vpop.f32.mrf.mxu1 }
 0x186   : > { %568 = vst [vmem:[#allocation2 + $0x48] sm:$0xff] %v552_v11  ;;  %576 = vst [vmem:[#allocation2 + $0x28] sm:$0xff] %v560_v12  ;;  %v551_v15 = vadd.f32 %v496_v13, %v358_v9  ;;  %v559_v16 = vadd.f32 %v536_v14, %v366_v10 }
 0x188   : > { %567 = vst [vmem:[#allocation2 + $0x8] sm:$0xff] %v551_v15  ;;  %575 = vst [vmem:[#allocation2 + $0x78] sm:$0xff] %v559_v16 }
 0x189   : > { %v612_v17 = vld [vmem:[#allocation8 + $0x78] sm:$0xff]  ;;  %v611_v18 = vld [vmem:[#allocation8 + $0x70] sm:$0xff]  ;;  %v610_v19 = vld [vmem:[#allocation8 + $0x68] sm:$0xff] }
 0x18a   : > { %1201 = vmatprep.subr.mxu0 %v612_v17  ;;  %1289 = vmatprep.subr.mxu1 %v612_v17  ;;  %v609_v20 = vld [vmem:[#allocation8 + $0x60] sm:$0xff]  ;;  %v608_v21 = vld [vmem:[#allocation8 + $0x58] sm:$0xff]  ;;  %v607_v22 = vld [vmem:[#allocation8 + $0x50] sm:$0xff] }
 0x18b   : > { %1202 = vmatpush3.msra.mxu0 %v612_v17  ;;  %1305 = vmatpush3.msra.mxu1 %v612_v17  ;;  %v606_v23 = vld [vmem:[#allocation8 + $0x48] sm:$0xff]  ;;  %v605_v24 = vld [vmem:[#allocation8 + $0x40] sm:$0xff]  ;;  %v604_v25 = vld [vmem:[#allocation8 + $0x38] sm:$0xff] }
 0x18c   : > { %1203 = vmatprep.subr.mxu0 %v611_v18  ;;  %1290 = vmatprep.subr.mxu1 %v611_v18  ;;  %v603_v26 = vld [vmem:[#allocation8 + $0x30] sm:$0xff]  ;;  %v602_v28 = vld [vmem:[#allocation8 + $0x28] sm:$0xff]  ;;  %v601_v29 = vld [vmem:[#allocation8 + $0x20] sm:$0xff] }
 0x18d   : > { %1204 = vmatpush3.msra.mxu0 %v611_v18  ;;  %1306 = vmatpush3.msra.mxu1 %v611_v18  ;;  %v581_v27 = vld [vmem:[#allocation2 + $0x30] sm:$0xff]  ;;  %v600_v30 = vld [vmem:[#allocation8 + $0x18] sm:$0xff]  ;;  %v598_v32 = vld [vmem:[#allocation8 + $0x8] sm:$0xff] }
 0x18e   : > { %1205 = vmatprep.subr.mxu0 %v610_v19  ;;  %1291 = vmatprep.subr.mxu1 %v610_v19  ;;  %v599_v31 = vld [vmem:[#allocation8 + $0x10] sm:$0xff]  ;;  %v597_v33 = vld [vmem:[#allocation8] sm:$0xff]  ;;  %v583_v35 = vld [vmem:[#allocation2 + $0x58] sm:$0xff] }
 0x18f   : > { %1206 = vmatpush3.msra.mxu0 %v610_v19  ;;  %1307 = vmatpush3.msra.mxu1 %v610_v19  ;;  %v582_v34 = vld [vmem:[#allocation2] sm:$0xff]  ;;  %v591_v38 = vld [vmem:[#allocation2 + $0x10] sm:$0xff]  ;;  %v584_v39 = vld [vmem:[#allocation2 + $0x18] sm:$0xff] }
 0x190   : > { %1207 = vmatprep.subr.mxu0 %v609_v20  ;;  %1292 = vmatprep.subr.mxu1 %v609_v20  ;;  %v589_v36 = vld [vmem:[#allocation2 + $0x40] sm:$0xff]  ;;  %v585_v40 = vld [vmem:[#allocation2 + $0x50] sm:$0xff]  ;;  %v592_v41 = vld [vmem:[#allocation2 + $0x38] sm:$0xff] }
 0x191   : > { %1208 = vmatpush3.msra.mxu0 %v609_v20  ;;  %1308 = vmatpush3.msra.mxu1 %v609_v20  ;;  %v590_v37 = vld [vmem:[#allocation2 + $0x20] sm:$0xff]  ;;  %v586_v43 = vld [vmem:[#allocation2 + $0x68] sm:$0xff]  ;;  %v594_v45 = vld [vmem:[#allocation2 + $0x70] sm:$0xff] }
 0x192   : > { %1209 = vmatprep.subr.mxu0 %v608_v21  ;;  %1293 = vmatprep.subr.mxu1 %v608_v21  ;;  %v593_v42 = vld [vmem:[#allocation2 + $0x60] sm:$0xff]  ;;  %v587_v44 = vld [vmem:[#allocation2 + $0x8] sm:$0xff]  ;;  %v595_v46 = vld [vmem:[#allocation2 + $0x78] sm:$0xff] }
 0x193   : > { %1210 = vmatpush3.msra.mxu0 %v608_v21  ;;  %1309 = vmatpush3.msra.mxu1 %v608_v21  ;;  %v588_v47 = vld [vmem:[#allocation2 + $0x48] sm:$0xff] }
 0x194   : > { %1211 = vmatprep.subr.mxu0 %v607_v22  ;;  %1294 = vmatprep.subr.mxu1 %v607_v22  ;;  %v596_v48 = vld [vmem:[#allocation2 + $0x28] sm:$0xff] }
 0x195   : > { %1212 = vmatpush3.msra.mxu0 %v607_v22  ;;  %1310 = vmatpush3.msra.mxu1 %v607_v22 }
 0x196   : > { %1213 = vmatprep.subr.mxu0 %v606_v23  ;;  %1295 = vmatprep.subr.mxu1 %v606_v23 }
 0x197   : > { %1214 = vmatpush3.msra.mxu0 %v606_v23  ;;  %1311 = vmatpush3.msra.mxu1 %v606_v23 }
 0x198   : > { %1215 = vmatprep.subr.mxu0 %v605_v24  ;;  %1296 = vmatprep.subr.mxu1 %v605_v24 }
 0x199   : > { %1216 = vmatpush3.msra.mxu0 %v605_v24  ;;  %1312 = vmatpush3.msra.mxu1 %v605_v24 }
 0x19a   : > { %1217 = vmatprep.subr.mxu0 %v604_v25  ;;  %1297 = vmatprep.subr.mxu1 %v604_v25 }
 0x19b   : > { %1218 = vmatpush3.msra.mxu0 %v604_v25  ;;  %1313 = vmatpush3.msra.mxu1 %v604_v25 }
 0x19c   : > { %1219 = vmatprep.subr.mxu0 %v603_v26  ;;  %1233 = vmatprep.mubr.f32.mxu0 %v581_v27 }
 0x19d   : > { %1220 = vmatpush3.msra.mxu0 %v603_v26  ;;  %1298 = vmatprep.subr.mxu1 %v603_v26 }
 0x19e   : > { %1221 = vmatprep.subr.mxu0 %v602_v28  ;;  %1314 = vmatpush3.msra.mxu1 %v603_v26 }
 0x19f   : > { %1222 = vmatpush3.msra.mxu0 %v602_v28  ;;  %1299 = vmatprep.subr.mxu1 %v602_v28 }
 0x1a0   : > { %1223 = vmatprep.subr.mxu0 %v601_v29  ;;  %1315 = vmatpush3.msra.mxu1 %v602_v28 }
 0x1a1   : > { %1224 = vmatpush3.msra.mxu0 %v601_v29  ;;  %1300 = vmatprep.subr.mxu1 %v601_v29 }
 0x1a2   : > { %1225 = vmatprep.subr.mxu0 %v600_v30  ;;  %1316 = vmatpush3.msra.mxu1 %v601_v29 }
 0x1a3   : > { %1226 = vmatpush3.msra.mxu0 %v600_v30  ;;  %1301 = vmatprep.subr.mxu1 %v600_v30 }
 0x1a4   : > { %1227 = vmatprep.subr.mxu0 %v599_v31  ;;  %1317 = vmatpush3.msra.mxu1 %v600_v30 }
 0x1a5   : > { %1228 = vmatpush3.msra.mxu0 %v599_v31  ;;  %1302 = vmatprep.subr.mxu1 %v599_v31 }
 0x1a6   : > { %1229 = vmatprep.subr.mxu0 %v598_v32  ;;  %1318 = vmatpush3.msra.mxu1 %v599_v31 }
 0x1a7   : > { %1230 = vmatpush3.msra.mxu0 %v598_v32  ;;  %1303 = vmatprep.subr.mxu1 %v598_v32 }
 0x1a8   : > { %1231 = vmatprep.subr.mxu0 %v597_v33  ;;  %1319 = vmatpush3.msra.mxu1 %v598_v32 }
 0x1a9   : > { %1232 = vmatpush3.msra.mxu0 %v597_v33  ;;  %1304 = vmatprep.subr.mxu1 %v597_v33 }
 0x1aa   : > { %1234 = vmatmul.mubr.f32.vlgmr.msra.gmra.mxu0 %v582_v34  ;;  %1320 = vmatpush3.msra.mxu1 %v597_v33 }
 0x1ab   : > { %1236 = vmatprep.mubr.f32.mxu0 %v583_v35  ;;  %1245 = vmatprep.mubr.f32.mxu1 %v589_v36 }
 0x1ac   : > { %1246 = vmatmul.mubr.f32.vlgmr.msra.gmra.mxu1 %v590_v37 }
 0x1ad   : > { %1248 = vmatprep.mubr.f32.mxu1 %v591_v38 }
 0x1ae   : > { %1237 = vmatmul.mubr.f32.gmra.mxu0 %v584_v39 }
 0x1af   : > { %1239 = vmatprep.mubr.f32.mxu0 %v585_v40 }
 0x1b0   : > { %1249 = vmatmul.mubr.f32.gmra.mxu1 %v592_v41 }
 0x1b1   : > { %1251 = vmatprep.mubr.f32.mxu1 %v593_v42 }
 0x1b2   : > { %1240 = vmatmul.mubr.f32.gmra.mxu0 %v586_v43 }
 0x1b3   : > { %1242 = vmatprep.mubr.f32.mxu0 %v587_v44 }
 0x1b4   : > { %1252 = vmatmul.mubr.f32.gmra.mxu1 %v594_v45 }
 0x1b5   : > { %1254 = vmatprep.mubr.f32.mxu1 %v595_v46 }
 0x1b6   : > { %1243 = vmatmul.mubr.f32.gmra.mxu0 %v588_v47 }
 0x1b8   : > { %1255 = vmatmul.mubr.f32.gmra.mxu1 %v596_v48 }
 0x26a   : > { %v1235_v49 = vpop.f32.mrf.mxu0 }
 0x26b   : > { %759 = vst [vmem:[%s2043_s16 + $0x8] sm:$0xff] %v1235_v49  ;;  %v797_v55 = vmul.f32 %v1235_v49, %v1235_v49 }
 0x26c   : > { %v679_v50 = vpop.f32.mrf.mxu0  ;;  %v1247_v51 = vpop.f32.mrf.mxu1 }
 0x26d   : > { %758 = vst [vmem:[%s2043_s16] sm:$0xff] %v679_v50  ;;  %v796_v52 = vmul.f32 %v679_v50, %v679_v50  ;;  %767 = vst [vmem:[%s2043_s16 + $0x48] sm:$0xff] %v1247_v51  ;;  %v774_v56 = vadd.f32 %v1235_v49, %v679_v50  ;;  %v805_v25 = vmul.f32 %v1247_v51, %v1247_v51 }
 0x26e   : > { %v1238_v53 = vpop.f32.mrf.mxu0  ;;  %v719_v54 = vpop.f32.mrf.mxu1 }
 0x26f   : > { %761 = vst [vmem:[%s2043_s16 + $0x18] sm:$0xff] %v1238_v53  ;;  %766 = vst [vmem:[%s2043_s16 + $0x40] sm:$0xff] %v719_v54  ;;  %v812_v59 = vadd.f32 %v797_v55, %v796_v52  ;;  %v799_v0 = vmul.f32 %v1238_v53, %v1238_v53  ;;  %v804_v24 = vmul.f32 %v719_v54, %v719_v54 }
 0x270   : > { %v689_v57 = vpop.f32.mrf.mxu0  ;;  %v1250_v58 = vpop.f32.mrf.mxu1 }
 0x271   : > { %760 = vst [vmem:[%s2043_s16 + $0x10] sm:$0xff] %v689_v57  ;;  %v775_v60 = vadd.f32 %v774_v56, %v689_v57  ;;  %v798_v61 = vmul.f32 %v689_v57, %v689_v57  ;;  %769 = vst [vmem:[%s2043_s16 + $0x58] sm:$0xff] %v1250_v58  ;;  %v807_v31 = vmul.f32 %v1250_v58, %v1250_v58 }
 0x272   : > { %v1241_v62 = vpop.f32.mrf.mxu0  ;;  %v729_v63 = vpop.f32.mrf.mxu1 }
 0x273   : > { %v813_v1 = vadd.f32 %v812_v59, %v798_v61  ;;  %763 = vst [vmem:[%s2043_s16 + $0x28] sm:$0xff] %v1241_v62  ;;  %v776_v2 = vadd.f32 %v1238_v53, %v775_v60  ;;  %768 = vst [vmem:[%s2043_s16 + $0x50] sm:$0xff] %v729_v63  ;;  %v801_v10 = vmul.f32 %v1241_v62, %v1241_v62 }
 0x274   : > { %v699_v3 = vpop.f32.mrf.mxu0  ;;  %v1253_v4 = vpop.f32.mrf.mxu1  ;;  %v806_v29 = vmul.f32 %v729_v63, %v729_v63 }
 0x275   : > { %762 = vst [vmem:[%s2043_s16 + $0x20] sm:$0xff] %v699_v3  ;;  %v777_v5 = vadd.f32 %v776_v2, %v699_v3  ;;  %v800_v6 = vmul.f32 %v699_v3, %v699_v3  ;;  %v814_v7 = vadd.f32 %v813_v1, %v799_v0  ;;  %771 = vst [vmem:[%s2043_s16 + $0x68] sm:$0xff] %v1253_v4 }
 0x276   : > { %v1244_v8 = vpop.f32.mrf.mxu0  ;;  %v739_v9 = vpop.f32.mrf.mxu1  ;;  %v809_v37 = vmul.f32 %v1253_v4, %v1253_v4 }
 0x277   : > { %v815_v11 = vadd.f32 %v814_v7, %v800_v6  ;;  %765 = vst [vmem:[%s2043_s16 + $0x38] sm:$0xff] %v1244_v8  ;;  %v778_v12 = vadd.f32 %v1241_v62, %v777_v5  ;;  %770 = vst [vmem:[%s2043_s16 + $0x60] sm:$0xff] %v739_v9  ;;  %v803_v19 = vmul.f32 %v1244_v8, %v1244_v8 }
 0x278   : > { %v709_v13 = vpop.f32.mrf.mxu0  ;;  %v1256_v14 = vpop.f32.mrf.mxu1  ;;  %v808_v35 = vmul.f32 %v739_v9, %v739_v9 }
 0x279   : > { %764 = vst [vmem:[%s2043_s16 + $0x30] sm:$0xff] %v709_v13  ;;  %v779_v15 = vadd.f32 %v778_v12, %v709_v13  ;;  %v802_v16 = vmul.f32 %v709_v13, %v709_v13  ;;  %v816_v17 = vadd.f32 %v815_v11, %v801_v10  ;;  %773 = vst [vmem:[%s2043_s16 + $0x78] sm:$0xff] %v1256_v14 }
 0x27a   : > { %v749_v18 = vpop.f32.mrf.mxu1  ;;  %v811_v43 = vmul.f32 %v1256_v14, %v1256_v14 }
 0x27b   : > { %v780_v20 = vadd.f32 %v1244_v8, %v779_v15  ;;  %v817_v21 = vadd.f32 %v816_v17, %v802_v16  ;;  %772 = vst [vmem:[%s2043_s16 + $0x70] sm:$0xff] %v749_v18  ;;  %v810_v41 = vmul.f32 %v749_v18, %v749_v18 }
 0x27d   : > { %v818_v22 = vadd.f32 %v817_v21, %v803_v19  ;;  %v781_v23 = vadd.f32 %v780_v20, %v719_v54 }
 0x27f   : > { %v819_v26 = vadd.f32 %v818_v22, %v804_v24  ;;  %v782_v27 = vadd.f32 %v1247_v51, %v781_v23 }
 0x281   : > { %v783_v28 = vadd.f32 %v782_v27, %v729_v63  ;;  %v820_v30 = vadd.f32 %v819_v26, %v805_v25 }
 0x283   : > { %v821_v32 = vadd.f32 %v820_v30, %v806_v29  ;;  %v784_v33 = vadd.f32 %v1250_v58, %v783_v28 }
 0x285   : > { %v785_v34 = vadd.f32 %v784_v33, %v739_v9  ;;  %v822_v36 = vadd.f32 %v821_v32, %v807_v31 }
 0x287   : > { %v823_v38 = vadd.f32 %v822_v36, %v808_v35  ;;  %v786_v39 = vadd.f32 %v1253_v4, %v785_v34 }
 0x289   : > { %v787_v40 = vadd.f32 %v786_v39, %v749_v18  ;;  %v824_v42 = vadd.f32 %v823_v38, %v809_v37 }
 0x28b   : > { %v788_v44 = vadd.f32 %v1256_v14, %v787_v40  ;;  %v825_v45 = vadd.f32 %v824_v42, %v810_v41 }
 0x28d   : > { %v789_v46 = vrot.slane %v788_v44, 4  ;;  %v826_v47 = vadd.f32 %v825_v45, %v811_v43 }
 0x28f   : > { %v790_v48 = vadd.f32 %v789_v46, %v788_v44  ;;  %v827_v49 = vrot.slane %v826_v47, 4 }
 0x291   : > { %v791_v50 = vrot.slane %v790_v48, 2  ;;  %v828_v51 = vadd.f32 %v827_v49, %v826_v47 }
 0x293   : > { %v792_v52 = vadd.f32 %v791_v50, %v790_v48  ;;  %v829_v53 = vrot.slane %v828_v51, 2 }
 0x295   : > { %v793_v54 = vrot.slane %v792_v52, 1  ;;  %v830_v55 = vadd.f32 %v829_v53, %v828_v51 }
 0x297   : > { %v794_v56 = vadd.f32 %v793_v54, %v792_v52  ;;  %v831_v57 = vrot.slane %v830_v55, 1 }
 0x299   : > { %795 = vst [vmem:[%s322_s17] sm:$0x1] %v794_v56  ;;  %v832_v58 = vadd.f32 %v831_v57, %v830_v55 }
 0x29b   : > { %833 = vst [vmem:[%s2260_s21] sm:$0x1] %v832_v58 }
 0x29c PF: > { %s2303_s4 = sld [smem:[#allocation21_spill]]  ;;  %s872_s28 = sshll.u32 %s322_s17, 4  ;;  %s873_s28 = int_to_ptr.vmem [resolvable:$true] %s872_s28 }
 0x29d   : > { %s2305_s8 = sld [smem:[#allocation24_spill]]  ;;  %s2111_s13 = scalar_lea.sflag [#allocation11], %s281_s11 }
 0x29e   : > { %s2306_s19 = sld [smem:[#allocation32_spill]]  ;;  %s1562_s2 = scalar_lea.vmem %s873_s28, 16 }
 0x29f   : > { %p1563_p5 = scmp.ne.s32.totalorder %s873_s28, %s1562_s2  ;;  %s1779_s21 = smov [#allocation10]  }
 0x2a0   : > { %s1566_s0 = sshll.u32 %s1779_s21, 4  ;;  %s1567_s0 = int_to_ptr.vmem [resolvable:$false] %s1566_s0 }
 0x2a1   : > { %s1568_s1 = scalar_lea.vmem %s1567_s0, 32  ;;  %p1569_p9 = scmp.lt.s32.totalorder %s873_s28, %s1567_s0 }
 0x2a2   : > { %s1075_s18 = sshll.u32 %s2303_s4, 4  ;;  %p1570_p4 = scmp.lt.s32.totalorder %s1568_s1, %s1562_s2 }
 0x2a3   : > { %p2308_p11 = scmp.ne.s32.totalorder %s2305_s8, 0 }
 0x2a4   : > { %s2307_s7 = smov %s2306_s19  ;;  %s870_s10 = scalar_lea.hbm %s2306_s19, %s1075_s18 }
 0x2a5   : > { %p1564_p0 = pnand %p1563_p5, %p2308_p11  ;;  %p1571_p12 = por %p1570_p4, %p1569_p9 }
 0x2a7   : > { %p1565_p8 = pneg %p1564_p0 }
 0x2a9   : > { %p1572_p6 = pnand %p1571_p12, %p1565_p8 }
 0x2ab   : > { %1575 = shalt.err (!%p1572_p6)
}
 0x2ac   : > { %s1576_s12 = scalar_lea.hbm %s870_s10, 16  ;;  %s1580_s27 = scalar_lea.hbm %s2307_s7, 48 }
 0x2ad   : > { %p1577_p7 = scmp.ne.s32.totalorder %s870_s10, %s1576_s12  ;;  %p1581_p3 = scmp.lt.s32.totalorder %s870_s10, %s2307_s7 }
 0x2ae   : > { %p1582_p10 = scmp.lt.s32.totalorder %s1580_s27, %s1576_s12 }
 0x2af   : > { %p1578_p13 = pnand %p1577_p7, %p2308_p11 }
 0x2b0   : > { %p1583_p1 = por %p1582_p10, %p1581_p3 }
 0x2b1   : > { %p1579_p2 = pneg %p1578_p13 }
 0x2b3   : > { %p1584_p5 = pnand %p1583_p1, %p1579_p2 }
 0x2b5   : > { %1587 = shalt.err (!%p1584_p5)
}
 0x2b6   : > { %1331 = dma.vmem_to_hbm [thread:$0]  (%p2308_p11), %s873_s28, 16, %s870_s10, %s2111_s13  }
 0x2b7   : > { %s1080_s0 = sshll.u32 %s2303_s4, 11  ;;  %s856_s1 = sshll.u32 %s2043_s16, 4  ;;  %s2133_s1 = int_to_ptr.vmem [resolvable:$true] %s856_s1 }
 0x2b8   : > { %s2309_s11 = sld [smem:[#allocation31_spill]]  ;;  %s835_s12 = scalar_lea.sflag [#allocation5], %s2040_s24 }
 0x2b9   : > { %s1588_s27 = scalar_lea.vmem %s2133_s1, 2048  ;;  %s1780_s14 = smov [#allocation9]  }
 0x2ba   : > { %p1589_p0 = scmp.ne.s32.totalorder %s2133_s1, %s1588_s27  ;;  %s1592_s10 = sshll.u32 %s1780_s14, 4  ;;  %s1593_s10 = int_to_ptr.vmem [resolvable:$false] %s1592_s10 }
 0x2bb   : > { %s1594_s16 = scalar_lea.vmem %s1593_s10, 4096  ;;  %p1595_p4 = scmp.lt.s32.totalorder %s2133_s1, %s1593_s10 }
 0x2bc   : > { %p1590_p8 = pnand %p1589_p0, %p2308_p11  ;;  %p1596_p12 = scmp.lt.s32.totalorder %s1594_s16, %s1588_s27 }
 0x2be   : > { %s2131_s17 = scalar_lea.hbm %s2309_s11, %s1080_s0  ;;  %p1591_p9 = pneg %p1590_p8 }
 0x2bf   : > { %p1597_p6 = por %p1596_p12, %p1595_p4 }
 0x2c1   : > { %p1598_p7 = pnand %p1597_p6, %p1591_p9 }
 0x2c3   : > { %1601 = shalt.err (!%p1598_p7)
}
 0x2c4   : > { %s1602_s28 = scalar_lea.hbm %s2131_s17, 2048  ;;  %s1606_s21 = scalar_lea.hbm %s2309_s11, 6144 }
 0x2c5   : > { %p1603_p13 = scmp.ne.s32.totalorder %s2131_s17, %s1602_s28  ;;  %p1607_p10 = scmp.lt.s32.totalorder %s2131_s17, %s2309_s11 }
 0x2c6   : > { %p1608_p1 = scmp.lt.s32.totalorder %s1606_s21, %s1602_s28 }
 0x2c7   : > { %p1604_p2 = pnand %p1603_p13, %p2308_p11 }
 0x2c8   : > { %p1609_p5 = por %p1608_p1, %p1607_p10 }
 0x2c9   : > { %p1605_p3 = pneg %p1604_p2 }
 0x2cb   : > { %p1610_p0 = pnand %p1609_p5, %p1605_p3 }
 0x2cd   : > { %1613 = shalt.err (!%p1610_p0)
}
 0x2ce   : > { %s1781_s27 = smov 128   ;;  %s1782_s10 = smov 8  }
 0x2cf   : > { %1330 = dma.vmem_to_hbm [thread:$0]  (%p2308_p11), %s2133_s1, 2048, %s2131_s17, %s835_s12, %s1781_s27, %s1781_s27, %s1782_s10  }
 0x2d0   : > { %s2310_s0 = sld [smem:[#allocation33_spill]]  ;;  %s2311_s21 = scalar_lea.vmem [#allocation12], %s2040_s24 }
 0x2d1   : > { %s885_s2 = sshll.u32 %s2311_s21, 4  ;;  %s1783_s7 = smov [#allocation12]   ;;  %s886_s2 = int_to_ptr.vmem [resolvable:$true] %s885_s2 }
 0x2d2   : > { %s1614_s14 = scalar_lea.vmem %s886_s2, 16  ;;  %s1618_s11 = sshll.u32 %s1783_s7, 4  ;;  %s1619_s11 = int_to_ptr.vmem [resolvable:$false] %s1618_s11 }
 0x2d3   : > { %p1615_p8 = scmp.ne.s32.totalorder %s886_s2, %s1614_s14  ;;  %s1620_s9 = scalar_lea.vmem %s1619_s11, 32 }
 0x2d4   : > { %p1621_p12 = scmp.lt.s32.totalorder %s886_s2, %s1619_s11  ;;  %p1622_p6 = scmp.lt.s32.totalorder %s1620_s9, %s1614_s14 }
 0x2d5   : > { %p1616_p9 = pnand %p1615_p8, %p2308_p11 }
 0x2d6   : > { %s883_s28 = scalar_lea.hbm %s2310_s0, %s1075_s18  ;;  %p1623_p7 = por %p1622_p6, %p1621_p12 }
 0x2d7   : > { %p1617_p4 = pneg %p1616_p9 }
 0x2d9   : > { %p1624_p13 = pnand %p1623_p7, %p1617_p4 }
 0x2db   : > { %1627 = shalt.err (!%p1624_p13)
}
 0x2dc   : > { %s1628_s4 = scalar_lea.hbm %s883_s28, 16  ;;  %s1632_s1 = scalar_lea.hbm %s2310_s0, 48 }
 0x2dd   : > { %p1629_p2 = scmp.ne.s32.totalorder %s883_s28, %s1628_s4  ;;  %p1633_p1 = scmp.lt.s32.totalorder %s883_s28, %s2310_s0 }
 0x2de   : > { %p1634_p5 = scmp.lt.s32.totalorder %s1632_s1, %s1628_s4 }
 0x2df   : > { %p1630_p3 = pnand %p1629_p2, %p2308_p11 }
 0x2e0   : > { %p1635_p0 = por %p1634_p5, %p1633_p1 }
 0x2e1   : > { %p1631_p10 = pneg %p1630_p3 }
 0x2e3   : > { %p1636_p8 = pnand %p1635_p0, %p1631_p10 }
 0x2e5   : > { %1639 = shalt.err (!%p1636_p8)
}
 0x2e6   : > { %1332 = dma.vmem_to_hbm [thread:$0]  (%p2308_p11), %s886_s2, 16, %s883_s28, %s2111_s13  }
 0x2e7 PF: > { %s2312_s9 = sld [smem:[#allocation18_spill]]  ;;  %p1360_p9 = scmp.ge.s32.totalorder %s1770_s6, 2 }
 0x2e8   : > { %s2313_s7 = sld [smem:[#allocation25_spill]] }
 0x2ed   : > { %s897_s11 = sand.u32 1, %s2312_s9  }
 0x2ee   : > { %p2314_p4 = scmp.ne.s32.totalorder %s2313_s7, 0  ;;  %s898_s27 = scalar_lea.sflag [#allocation5], %s897_s11 }
 0x2f0   : > { %p1348_p12 = pnand %p1360_p9, %p2314_p4 }
 0x2f2   : > { %p1349_p6 = pneg %p1348_p12 }
 0x2f4   : > { %1709 = dma.done.wait (%p1349_p6), %s898_s27, 2048  }
 0x2f5   : > { %1711 = vsyncadd (%p1349_p6), %s898_s27, 4294965248  ;;  %s2315_s10 = sadd.s32 4294967294, %s1770_s6  }
 0x2f6   : > { %s906_s16 = sand.u32 1, %s2315_s10  }
 0x2f7   : > { %s907_s19 = scalar_lea.sflag [#allocation11], %s906_s16 }
 0x2f8   : > { %1713 = dma.done.wait (%p1349_p6), %s907_s19, 32  }
 0x2f9   : > { %1715 = vsyncadd (%p1349_p6), %s907_s19, 4294967264  ;;  %s28_s6 = sadd.s32 1, %s1770_s6   ;;  %s2317_s18 = sld [smem:[#allocation19_spill]] }
 0x2fa   : > { %p2185_p11 = scmp.ge.s32.totalorder %s28_s6, 11   ;;  %s2318_s13 = sld [smem:[#allocation26_spill]] }
 0x2fb   : > { %s2319_s2 = sld [smem:[#allocation27_spill]]  ;;  %s2320_s19 = smov %s1726_s20 }
 0x2fc   : > { %s2321_s20 = smov %s1962_s5  ;;  %s2322_s21 = smov %s1734_s22 }
 0x2fd   : > { %s2323_s22 = smov %s1738_s23  ;;  %s2324_s23 = smov %s1992_s15 }
 0x2fe   : > { %s2325_s24 = smov %s1746_s25  ;;  %s2326_s25 = smov %s1750_s26 }
 0x2ff   : > { %s2327_s26 = smov %s1965_s3  ;;  %s2328_s27 = smov %s1762_s29 }
 0x300   : > { %s2329_s28 = smov %s1766_s30  ;;  %s2330_s29 = smov %s2318_s13 }
 0x301   : > { %s2331_s30 = smov %s2319_s2  ;;  %27 = sbr.rel (!%p2185_p11) target bundleno = 21 (0x15), region = 134 }
 0x306   :  { %919 = vsyncpa [#allocation4], 1 }
 0x307   :  { %921 = vsyncpa [#allocation4 + $0x1], 1 }
 0x308   :  { %922 = vsyncpa [#allocation7], 1 }
 0x309   :  { %924 = vsyncpa [#allocation7 + $0x1], 1 }
 0x30a   :  { %925 = vsyncpa [#allocation5], 1 }
 0x30b   :  { %927 = vsyncpa [#allocation5 + $0x1], 1 }
 0x30c   :  { %928 = vsyncpa [#allocation11], 1 }
 0x30d   :  { %930 = vsyncpa [#allocation11 + $0x1], 1 }

</bundles_post_ra>
